<compile_context>
chip_gen: v6e
topology: v6e:2x2x1
jax: 0.10.0
libtpu: 0.0.40
codegen_flags: <defaults>
</compile_context>

<pallas_src>
import functools

import jax
import jax.numpy as jnp
from jax import lax
from jax.experimental import pallas as pl
from jax.experimental.pallas import tpu as pltpu


def _idwt_kernel(x_ref, se_ref, so_ref, out_ref):
    """One (batch, out_channel, row-tile) step of the IDWT.

    x_ref  : (1, 4, 1, TH, W)  the four sub-band tiles
    se_ref : (W, 2W)           se[j, 2j]     = 1  (scatter to even columns)
    so_ref : (W, 2W)           so[j, 2j + 1] = 1  (scatter to odd columns)
    out_ref: (1, 1, TH, 4W)    fat rows: [even output row | odd output row]
    """
    two_w = se_ref.shape[1]

    x1 = x_ref[0, 0, 0, :, :].astype(jnp.float32) * 0.5
    x2 = x_ref[0, 1, 0, :, :].astype(jnp.float32) * 0.5
    x3 = x_ref[0, 2, 0, :, :].astype(jnp.float32) * 0.5
    x4 = x_ref[0, 3, 0, :, :].astype(jnp.float32) * 0.5

    a00 = x1 - x2 - x3 + x4   # even row, even col
    a01 = x1 + x2 - x3 - x4   # even row, odd  col
    a10 = x1 - x2 + x3 - x4   # odd  row, even col
    a11 = x1 + x2 + x3 + x4   # odd  row, odd  col

    se = se_ref[...]
    so = so_ref[...]
    dot = functools.partial(jnp.dot, preferred_element_type=jnp.float32,
                            precision=lax.Precision.HIGHEST)
    even = dot(a00, se) + dot(a01, so)     # (TH, 2W): interleaved even row
    odd = dot(a10, se) + dot(a11, so)      # (TH, 2W): interleaved odd row

    out_ref[0, 0, :, 0:two_w] = even.astype(out_ref.dtype)
    out_ref[0, 0, :, two_w:2 * two_w] = odd.astype(out_ref.dtype)


def idwt(x):
    """x: (B, 4*C, H, W) float -> (B, C, 2*H, 2*W), matching idwt_init()."""
    B, C4, H, W = x.shape
    assert C4 % 4 == 0, "input channels must be a multiple of 4"
    C = C4 // 4
    TH = 8 if H % 8 == 0 else H            # sublane-aligned row tile when possible

    # Channel index = band * C + c, so this reshape is free (no data movement).
    x5 = x.reshape(B, 4, C, H, W)

    # Constant 0/1 scatter matrices: a @ se puts a[:, j] at column 2j,
    # b @ so puts b[:, j] at column 2j + 1 (exact in f32).
    j = jnp.arange(W)
    se = jnp.zeros((W, 2 * W), jnp.float32).at[j, 2 * j].set(1.0)
    so = jnp.zeros((W, 2 * W), jnp.float32).at[j, 2 * j + 1].set(1.0)

    out_fat = pl.pallas_call(
        _idwt_kernel,
        out_shape=jax.ShapeDtypeStruct((B, C, H, 4 * W), x.dtype),
        grid_spec=pltpu.PrefetchScalarGridSpec(
            num_scalar_prefetch=0,
            grid=(B, C, H // TH),
            in_specs=[
                pl.BlockSpec((1, 4, 1, TH, W), lambda b, c, i: (b, 0, c, i, 0)),
                pl.BlockSpec((W, 2 * W), lambda b, c, i: (0, 0)),
                pl.BlockSpec((W, 2 * W), lambda b, c, i: (0, 0)),
            ],
            out_specs=pl.BlockSpec((1, 1, TH, 4 * W),
                                   lambda b, c, i: (b, c, i, 0)),
        ),
        compiler_params=pltpu.CompilerParams(
            dimension_semantics=("parallel", "parallel", "parallel")),
    )(x5, se, so)

    # Fat row i = [output row 2i | output row 2i+1], so this is a pure
    # row-major reshape (no data movement).
    return out_fat.reshape(B, C, 2 * H, 2 * W)


def _idwt_reference(x):
    """Pure-JAX port of the PyTorch idwt_init for correctness checking."""
    B, C4, H, W = x.shape
    C = C4 // 4
    x1 = x[:, 0:C] / 2
    x2 = x[:, C:2 * C] / 2
    x3 = x[:, 2 * C:3 * C] / 2
    x4 = x[:, 3 * C:4 * C] / 2
    h = jnp.zeros((B, C, 2 * H, 2 * W), x.dtype)
    h = h.at[:, :, 0::2, 0::2].set(x1 - x2 - x3 + x4)
    h = h.at[:, :, 1::2, 0::2].set(x1 - x2 + x3 - x4)
    h = h.at[:, :, 0::2, 1::2].set(x1 + x2 - x3 - x4)
    h = h.at[:, :, 1::2, 1::2].set(x1 + x2 + x3 + x4)
    return h


if __name__ == "__main__":
    key = jax.random.PRNGKey(0)
    B, C4, H, W = 2, 4, 16, 16             # -> output (2, 1, 32, 32)
    x = jax.random.normal(key, (B, C4, H, W), dtype=jnp.float32)

    out = jax.jit(idwt)(x)
    out = jax.block_until_ready(out)

    ref = _idwt_reference(x)
    assert out.shape == (B, C4 // 4, 2 * H, 2 * W), out.shape
    assert jnp.allclose(out, ref, atol=1e-5, rtol=1e-5), "mismatch vs reference"

    print("KERNEL_OK")
</pallas_src>

<mosaic_0001>
module attributes {stable_mosaic.version = 11 : i64} {
  func.func @_idwt_kernel(%arg0: i32, %arg1: i32, %arg2: i32, %arg3: memref<1x4x1x8x16xf32, #tpu.memory_space<vmem>>, %arg4: memref<16x32xf32, #tpu.memory_space<vmem>>, %arg5: memref<16x32xf32, #tpu.memory_space<vmem>>, %arg6: memref<1x1x8x64xf32, #tpu.memory_space<vmem>>) attributes {dimension_semantics = [#tpu.dimension_semantics<parallel>, #tpu.dimension_semantics<parallel>, #tpu.dimension_semantics<parallel>], iteration_bounds = array<i64: 2, 1, 2>, scalar_prefetch = 0 : i64, scratch_operands = 0 : i64, tpu.core_type = #tpu.core_type<tc>, window_params = [{transform_indices = @transform_0, window_bounds = array<i64: 1, 4, 1, 8, 16>}, {pipeline_mode = #tpu.pipeline_mode<synchronous>, transform_indices = @transform_1, window_bounds = array<i64: 16, 32>}, {pipeline_mode = #tpu.pipeline_mode<synchronous>, transform_indices = @transform_2, window_bounds = array<i64: 16, 32>}, {transform_indices = @transform_3, window_bounds = array<i64: 1, 1, 8, 64>}]} {
    %c0 = arith.constant 0 : index
    %c0_0 = arith.constant 0 : index
    %c0_1 = arith.constant 0 : index
    %c0_2 = arith.constant 0 : index
    %c0_3 = arith.constant 0 : index
    %0 = vector.load %arg3[%c0, %c0_0, %c0_1, %c0_2, %c0_3] : memref<1x4x1x8x16xf32, #tpu.memory_space<vmem>>, vector<1x1x1x8x16xf32>
    %1 = vector.shape_cast %0 : vector<1x1x1x8x16xf32> to vector<8x16xf32>
    %cst = arith.constant 5.000000e-01 : f32
    %2 = vector.broadcast %cst : f32 to vector<8x16xf32>
    %3 = arith.mulf %1, %2 : vector<8x16xf32>
    %c0_4 = arith.constant 0 : index
    %c1 = arith.constant 1 : index
    %c0_5 = arith.constant 0 : index
    %c0_6 = arith.constant 0 : index
    %c0_7 = arith.constant 0 : index
    %4 = vector.load %arg3[%c0_4, %c1, %c0_5, %c0_6, %c0_7] : memref<1x4x1x8x16xf32, #tpu.memory_space<vmem>>, vector<1x1x1x8x16xf32>
    %5 = vector.shape_cast %4 : vector<1x1x1x8x16xf32> to vector<8x16xf32>
    %cst_8 = arith.constant 5.000000e-01 : f32
    %6 = vector.broadcast %cst_8 : f32 to vector<8x16xf32>
    %7 = arith.mulf %5, %6 : vector<8x16xf32>
    %c0_9 = arith.constant 0 : index
    %c2 = arith.constant 2 : index
    %c0_10 = arith.constant 0 : index
    %c0_11 = arith.constant 0 : index
    %c0_12 = arith.constant 0 : index
    %8 = vector.load %arg3[%c0_9, %c2, %c0_10, %c0_11, %c0_12] : memref<1x4x1x8x16xf32, #tpu.memory_space<vmem>>, vector<1x1x1x8x16xf32>
    %9 = vector.shape_cast %8 : vector<1x1x1x8x16xf32> to vector<8x16xf32>
    %cst_13 = arith.constant 5.000000e-01 : f32
    %10 = vector.broadcast %cst_13 : f32 to vector<8x16xf32>
    %11 = arith.mulf %9, %10 : vector<8x16xf32>
    %c0_14 = arith.constant 0 : index
    %c3 = arith.constant 3 : index
    %c0_15 = arith.constant 0 : index
    %c0_16 = arith.constant 0 : index
    %c0_17 = arith.constant 0 : index
    %12 = vector.load %arg3[%c0_14, %c3, %c0_15, %c0_16, %c0_17] : memref<1x4x1x8x16xf32, #tpu.memory_space<vmem>>, vector<1x1x1x8x16xf32>
    %13 = vector.shape_cast %12 : vector<1x1x1x8x16xf32> to vector<8x16xf32>
    %cst_18 = arith.constant 5.000000e-01 : f32
    %14 = vector.broadcast %cst_18 : f32 to vector<8x16xf32>
    %15 = arith.mulf %13, %14 : vector<8x16xf32>
    %16 = arith.subf %3, %7 : vector<8x16xf32>
    %17 = arith.subf %16, %11 : vector<8x16xf32>
    %18 = arith.addf %17, %15 : vector<8x16xf32>
    %19 = arith.addf %3, %7 : vector<8x16xf32>
    %20 = arith.subf %19, %11 : vector<8x16xf32>
    %21 = arith.subf %20, %15 : vector<8x16xf32>
    %22 = arith.subf %3, %7 : vector<8x16xf32>
    %23 = arith.addf %22, %11 : vector<8x16xf32>
    %24 = arith.subf %23, %15 : vector<8x16xf32>
    %25 = arith.addf %3, %7 : vector<8x16xf32>
    %26 = arith.addf %25, %11 : vector<8x16xf32>
    %27 = arith.addf %26, %15 : vector<8x16xf32>
    %c0_19 = arith.constant 0 : index
    %c0_20 = arith.constant 0 : index
    %28 = vector.load %arg4[%c0_19, %c0_20] : memref<16x32xf32, #tpu.memory_space<vmem>>, vector<16x32xf32>
    %c0_21 = arith.constant 0 : index
    %c0_22 = arith.constant 0 : index
    %29 = vector.load %arg5[%c0_21, %c0_22] : memref<16x32xf32, #tpu.memory_space<vmem>>, vector<16x32xf32>
    %cst_23 = arith.constant dense<0.000000e+00> : vector<8x32xf32>
    %30 = tpu.matmul %18, %28, %cst_23 {dimension_numbers = #tpu.dot_dimension_numbers<[1], [0], [0], [1], [0, 0, 1, 1], [], []>, precision = #tpu.contract_precision<fp32>} : vector<8x16xf32>, vector<16x32xf32>, vector<8x32xf32> -> vector<8x32xf32>
    %cst_24 = arith.constant dense<0.000000e+00> : vector<8x32xf32>
    %31 = tpu.matmul %21, %29, %cst_24 {dimension_numbers = #tpu.dot_dimension_numbers<[1], [0], [0], [1], [0, 0, 1, 1], [], []>, precision = #tpu.contract_precision<fp32>} : vector<8x16xf32>, vector<16x32xf32>, vector<8x32xf32> -> vector<8x32xf32>
    %32 = arith.addf %30, %31 : vector<8x32xf32>
    %cst_25 = arith.constant dense<0.000000e+00> : vector<8x32xf32>
    %33 = tpu.matmul %24, %28, %cst_25 {dimension_numbers = #tpu.dot_dimension_numbers<[1], [0], [0], [1], [0, 0, 1, 1], [], []>, precision = #tpu.contract_precision<fp32>} : vector<8x16xf32>, vector<16x32xf32>, vector<8x32xf32> -> vector<8x32xf32>
    %cst_26 = arith.constant dense<0.000000e+00> : vector<8x32xf32>
    %34 = tpu.matmul %27, %29, %cst_26 {dimension_numbers = #tpu.dot_dimension_numbers<[1], [0], [0], [1], [0, 0, 1, 1], [], []>, precision = #tpu.contract_precision<fp32>} : vector<8x16xf32>, vector<16x32xf32>, vector<8x32xf32> -> vector<8x32xf32>
    %35 = arith.addf %33, %34 : vector<8x32xf32>
    %c0_27 = arith.constant 0 : index
    %c0_28 = arith.constant 0 : index
    %c0_29 = arith.constant 0 : index
    %c0_30 = arith.constant 0 : index
    %36 = vector.load %arg6[%c0_27, %c0_28, %c0_29, %c0_30] : memref<1x1x8x64xf32, #tpu.memory_space<vmem>>, vector<1x1x8x32xf32>
    %37 = vector.shape_cast %36 : vector<1x1x8x32xf32> to vector<8x32xf32>
    %38 = vector.shape_cast %32 : vector<8x32xf32> to vector<1x1x8x32xf32>
    tpu.vector_store %arg6[%c0_27, %c0_28, %c0_29, %c0_30], %38 {strides = array<i32>} : memref<1x1x8x64xf32, #tpu.memory_space<vmem>>, vector<1x1x8x32xf32>,
    %c0_31 = arith.constant 0 : index
    %c0_32 = arith.constant 0 : index
    %c0_33 = arith.constant 0 : index
    %c32 = arith.constant 32 : index
    %39 = vector.load %arg6[%c0_31, %c0_32, %c0_33, %c32] : memref<1x1x8x64xf32, #tpu.memory_space<vmem>>, vector<1x1x8x32xf32>
    %40 = vector.shape_cast %39 : vector<1x1x8x32xf32> to vector<8x32xf32>
    %41 = vector.shape_cast %35 : vector<8x32xf32> to vector<1x1x8x32xf32>
    tpu.vector_store %arg6[%c0_31, %c0_32, %c0_33, %c32], %41 {strides = array<i32>} : memref<1x1x8x64xf32, #tpu.memory_space<vmem>>, vector<1x1x8x32xf32>,
    return
  }
  func.func @transform_0(%arg0: i32, %arg1: i32, %arg2: i32) -> (i32, i32, i32, i32, i32) {
    %c0_i32 = arith.constant 0 : i32
    %c0_i32_0 = arith.constant 0 : i32
    %c0_i32_1 = arith.constant 0 : i32
    return %arg0, %c0_i32, %arg1, %arg2, %c0_i32_0 : i32, i32, i32, i32, i32
  }
  func.func @transform_1(%arg0: i32, %arg1: i32, %arg2: i32) -> (i32, i32) {
    %c0_i32 = arith.constant 0 : i32
    %c0_i32_0 = arith.constant 0 : i32
    %c0_i32_1 = arith.constant 0 : i32
    return %c0_i32, %c0_i32_0 : i32, i32
  }
  func.func @transform_2(%arg0: i32, %arg1: i32, %arg2: i32) -> (i32, i32) {
    %c0_i32 = arith.constant 0 : i32
    %c0_i32_0 = arith.constant 0 : i32
    %c0_i32_1 = arith.constant 0 : i32
    return %c0_i32, %c0_i32_0 : i32, i32
  }
  func.func @transform_3(%arg0: i32, %arg1: i32, %arg2: i32) -> (i32, i32, i32, i32) {
    %c0_i32 = arith.constant 0 : i32
    %c0_i32_0 = arith.constant 0 : i32
    return %arg0, %arg1, %arg2, %c0_i32 : i32, i32, i32, i32
  }
}

</mosaic_0001>

<bundles_post_ra>
// kernel: idwt.1
= control target key start
LH: loop header
LB: loop body
LE: loop exit
PB: predicated region body
PF: predicated region fallthrough
CT: control target
= control target key end

     0   :  { %s2648_s12 = smov 0   ;;  %s2650_s13 = smov 0   ;;  %s2985_s0 = inlined_call_operand.vmem [shape: f32[2,4,1,16,16], index: 0, kind: input, shape index: {}]   ;;  %s2986_s1 = inlined_call_operand.vmem [shape: f32[16,32], index: 1, kind: input, shape index: {}]   ;;  %s2987_s2 = inlined_call_operand.vmem [shape: f32[16,32], index: 2, kind: input, shape index: {}]   ;;  %s2988_s3 = inlined_call_operand.vmem [shape: f32[2,1,16,64], index: 3, kind: output, shape index: {}]  }
   0x1   :  { %s2652_s14 = smov 0   ;;  %s2654_s15 = smov 0  }
   0x2   :  { %s2656_s16 = smov 0   ;;  %s2658_s17 = smov 0  }
   0x3   :  { %s2660_s18 = smov 0  }
   0x4 LB: > { %s25_s19 = sadd.s32 1, %s2615_s16  ;;  %s32_s20 = sadd.s32 1, %s2619_s17  ;;  %s2623_s18 = sphi %s2660_s18, %s13_s18   ;;  %s2619_s17 = sphi %s2658_s17, %s2994_s17   ;;  %s2615_s16 = sphi %s2656_s16, %s2993_s16   ;;  %s2611_s15 = sphi %s2654_s15, %s2992_s15   ;;  %s2607_s14 = sphi %s2652_s14, %s2991_s14   ;;  %s2603_s13 = sphi %s2650_s13, %s2990_s13   ;;  %s2599_s12 = sphi %s2648_s12, %s2989_s12  }
   0x5   : > { %p26_p0 = scmp.ge.s32.totalorder %s25_s19, 2  ;;  %p50_p1 = scmp.ne.s32.totalorder %s2603_s13, %s2599_s12 }
   0x6   : > { %p51_p2 = scmp.eq.s32.totalorder %s2623_s18, 0  ;;  %s43_s24 = sadd.s32 1, %s2603_s13 }
   0x7   : > { %s2996_s19 = smov (%p26_p0, %s25_s19), 0  ;;  %s2998_s20 = smov (!%p26_p0, %s32_s20), %s2619_s17 }
   0x8   : > { %p52_p3 = por %p51_p2, %p50_p1  ;;  %p34_p4 = scmp.ge.s32.totalorder %s2998_s20, 2 }
   0x9   : > { %s39_s21 = ssub.s32 %s2615_s16, %s2996_s19  ;;  %p2257_p6 = scmp.ge.s32.totalorder %s2623_s18, 4 }
   0xa   : > { %s3000_s20 = smov (%p34_p4, %s2998_s20), 0 }
   0xb   : > { %s36_s22 = ssub.s32 %s2619_s17, %s3000_s20  ;;  %154 = sbr.rel (%p2257_p6) target bundleno = 24 (0x18), region = 24 }
   0xc   : > { %s40_s23 = sor.u32 %s39_s21, %s36_s22 }
   0xd   : > { %p41_p5 = scmp.eq.s32.totalorder %s40_s23, 0 }
   0xf   : > { %s2699_s25 = scalar_select %p41_p5, %s2603_s13, %s43_s24  }
  0x10   : > { %157 = sbr.rel (!%p52_p3) target bundleno = 24 (0x18), region = 28  ;;  %s159_s26 = sand.u32 (%p52_p3), 1, %s2603_s13  }
  0x11   : > { %s2259_s27 = sshll.u32 (%p52_p3), %s2619_s17, 3  ;;  %s2258_s28 = sshll.u32 (%p52_p3), %s159_s26, 5 }
  0x12   : > { %s165_s29 = sadd.s32 (%p52_p3), %s2615_s16, %s2259_s27  ;;  %s161_s7 = scalar_lea.vmem (%p52_p3), [#allocation2], %s2258_s28 }
  0x13   : > { %s2260_s30 = sshll.u32 (%p52_p3), %s165_s29, 3 }
  0x14   : > { %s167_s6 = scalar_lea.vmem (%p52_p3), %s2985_s0, %s2260_s30 }
  0x15   : > { %v202_v0 = vld [vmem:[%s167_s6] sm:$0xff]  ;;  %v204_v1 = vld [vmem:[%s167_s6 + $0x10] sm:$0xff] }
  0x16   : > { %v206_v2 = vld [vmem:[%s167_s6 + $0x20] sm:$0xff]  ;;  %203 = vst [vmem:[%s161_s7] sm:$0xff] %v202_v0  ;;  %205 = vst [vmem:[%s161_s7 + $0x8] sm:$0xff] %v204_v1  ;;  %v208_v3 = vld [vmem:[%s167_s6 + $0x30] sm:$0xff] }
  0x17   : > { %207 = vst [vmem:[%s161_s7 + $0x10] sm:$0xff] %v206_v2  ;;  %209 = vst [vmem:[%s161_s7 + $0x18] sm:$0xff] %v208_v3 }
  0x18 PF: > { %p2261_p7 = scmp.ge.s32.totalorder %s2623_s18, 1  ;;  %p214_p8 = scmp.lt.s32.totalorder %s2623_s18, 5 }
  0x1a   : > { %p215_p9 = pnand %p2261_p7, %p214_p8 }
  0x1b   : > { %s221_s21 = sand.u32 (!%p215_p9), 1, %s2599_s12   ;;  %p251_p10 = scmp.lt.s32.totalorder (!%p215_p9), %s2611_s15, 1 }
  0x1c   : > { %218 = sbr.rel (%p215_p9) target bundleno = 427 (0x1ab), region = 66  ;;  %s2262_s22 = sshll.u32 (!%p215_p9), %s221_s21, 5 }
  0x1d   : > { %s223_s12 = scalar_lea.vmem (!%p215_p9), [#allocation2], %s2262_s22  ;;  %p255_p11 = scmp.lt.s32.totalorder (!%p215_p9), %s2607_s14, 1 }
  0x21   : > { %v287_v4 = vld [vmem:[%s2987_s2 + $0x8] sm:$0xff]  ;;  %v286_v5 = vld [vmem:[%s2987_s2] sm:$0xff]  ;;  %v2625_v6 = vmov 0.0   ;;  %vm2626_vm0 = vmmov 0   ;;  %v2266_v14 = vld [vmem:[%s223_s12 + $0x10] sm:$0xff]  ;;  %vm288_vm1 = vcmask 130048  }
  0x22   : > { %2342 = vmatprep.subr.mxu0 %v2625_v6  ;;  %v2718_v7 = vand.u32 4294901760, %v287_v4  ;;  %2349 = vmatprep.subr.mxu1 %v2625_v6  ;;  %v2721_v8 = vand.u32 4294901760, %v286_v5  ;;  %v285_v9 = vld [vmem:[%s2986_s1 + $0x8] sm:$0xff]  ;;  %v263_v12 = vld [vmem:[%s223_s12] sm:$0xff]  ;;  %v2738_v17 = vmul.f32 0.5, %v2266_v14  ;;  %v2267_v18 = vld [vmem:[%s223_s12 + $0x18] sm:$0xff] }
  0x23   : > { %2346 = vmatprep.mubr.msk.f32.mxu0 %vm2626_vm0, %v2625_v6  ;;  %2353 = vmatprep.mubr.msk.f32.mxu1 %vm2626_vm0, %v2625_v6  ;;  %v2265_v13 = vld [vmem:[%s223_s12 + $0x8] sm:$0xff]  ;;  %v264_v15 = vmul.f32 0.5, %v263_v12  ;;  %v2748_v21 = vmul.f32 0.5, %v2267_v18  ;;  %v2750_v23 = vand.u32 4294901760, %v285_v9  ;;  %v284_v27 = vld [vmem:[%s2986_s1] sm:$0xff]  ;;  %s3002_s15 = smov (!%p251_p10, %s2611_s15), 1 }
  0x24   : > { %2343 = vmatpush3.msra.mxu0 %v2718_v7  ;;  %v2732_v10 = vsub.f32 %v287_v4, %v2718_v7  ;;  %v2735_v11 = vsub.f32 %v286_v5, %v2721_v8  ;;  %v267_v16 = vmul.f32 0.5, %v2265_v13  ;;  %v2772_v34 = vand.u32 4294901760, %v284_v27  ;;  %s3004_s14 = smov (!%p255_p11, %s2607_s14), 1  ;;  %s2263_s28 = sshll.u32 %s3002_s15, 1 }
  0x25   : > { %2344 = vmatprep.subr.mxu0 %v2625_v6  ;;  %v2770_v33 = vsub.f32 %v285_v9, %v2750_v23  ;;  %s260_s29 = sadd.s32 %s2263_s28, %s3004_s14  ;;  %vm2137_vm2 = vcmask 261120   ;;  %s2627_s14 = smov 32   ;;  %vm2143_vm3 = vcmask 523520  }
  0x26   : > { %v2741_v19 = vand.u32 4294901760, %v2732_v10  ;;  %2345 = vmatpush3.msra.mxu0 %v2721_v8  ;;  %v2745_v20 = vand.u32 4294901760, %v2735_v11  ;;  %v277_v22 = vadd.f32 %v267_v16, %v264_v15  ;;  %v2752_v24 = vsub.f32 %v264_v15, %v267_v16  ;;  %s2264_s30 = sshll.u32 %s260_s29, 3 }
  0x27   : > { %2356 = vmatprep.subr.mxu0 %v2625_v6  ;;  %v2782_v39 = vand.u32 4294901760, %v2770_v33  ;;  %v2785_v40 = vsub.f32 %v284_v27, %v2772_v34  ;;  %s2960_s6 = scalar_lea.vmem %s2988_s3, %s2264_s30 }
  0x28   : > { %v401_v25 = vsub.f32 %v2732_v10, %v2741_v19  ;;  %v408_v26 = vsub.f32 %v2735_v11, %v2745_v20  ;;  %v278_v28 = vsub.f32 %v277_v22, %v2738_v17  ;;  %v275_v29 = vsub.f32 %v2752_v24, %v2738_v17 }
  0x29   : > { %v863_v44 = vsub.f32 %v2770_v33, %v2782_v39  ;;  %v2797_v45 = vand.u32 4294901760, %v2785_v40  ;;  %v282_v51 = vadd.f32 %v277_v22, %v2738_v17  ;;  %v280_v60 = vadd.f32 %v2752_v24, %v2738_v17 }
  0x2a   : > { %v2764_v30 = vand.u32 4294901760, %v401_v25  ;;  %v2766_v31 = vand.u32 4294901760, %v408_v26  ;;  %v279_v32 = vsub.f32 %v278_v28, %v2748_v21  ;;  %v276_v35 = vadd.f32 %v275_v29, %v2748_v21 }
  0x2b   : > { %v2806_v49 = vand.u32 4294901760, %v863_v44  ;;  %v870_v50 = vsub.f32 %v2785_v40, %v2797_v45  ;;  %v283_v54 = vadd.f32 %v282_v51, %v2748_v21  ;;  %v281_v62 = vsub.f32 %v280_v60, %v2748_v21 }
  0x2c   : > { %2350 = vmatpush3.msra.mxu1 %v2764_v30  ;;  %v290_v36 = vsel %vm288_vm1, %v279_v32, 0  ;;  %v752_v37 = vsel %vm288_vm1, %v276_v35, 0 }
  0x2d   : > { %2351 = vmatprep.subr.mxu1 %v2625_v6  ;;  %v359_v38 = vand.u32 4294901760, %v290_v36  ;;  %v2787_v42 = vand.u32 4294901760, %v752_v37  ;;  %v2818_v53 = vand.u32 4294901760, %v870_v50  ;;  %v1214_v56 = vsel %vm288_vm1, %v283_v54, 0 }
  0x2e   : > { %2352 = vmatpush3.msra.mxu1 %v2766_v31  ;;  %v2837_v58 = vand.u32 4294901760, %v1214_v56  ;;  %v1676_v0 = vsel %vm288_vm1, %v281_v62, 0 }
  0x2f   : > { %2363 = vmatprep.subr.mxu1 %v2625_v6  ;;  %v360_v41 = vsub.f32 %v290_v36, %v359_v38  ;;  %2354 = vmatmul.mubr.f32.vlgmr.msra.gmra.mxu1 %v359_v38  ;;  %v822_v47 = vsub.f32 %v752_v37, %v2787_v42  ;;  %v2882_v2 = vand.u32 4294901760, %v1676_v0 }
  0x30   : > { %2364 = vmatpush3.msra.mxu1 %v2718_v7  ;;  %2367 = vmatprep.mubr.msk.f32.mxu1 %vm2626_vm0, %v2625_v6  ;;  %v1284_v59 = vsub.f32 %v1214_v56, %v2837_v58 }
  0x31   : > { %v361_v43 = vand.u32 4294901760, %v360_v41  ;;  %2365 = vmatprep.subr.mxu1 %v2625_v6  ;;  %v823_v52 = vand.u32 4294901760, %v822_v47  ;;  %v1746_v3 = vsub.f32 %v1676_v0, %v2882_v2 }
  0x32   : > { %2366 = vmatpush3.msra.mxu1 %v2721_v8  ;;  %v1285_v61 = vand.u32 4294901760, %v1284_v59 }
  0x33   : > { %v362_v46 = vsub.f32 %v360_v41, %v361_v43  ;;  %2368 = vmatmul.mubr.f32.vlgmr.msra.gmra.mxu1 %v361_v43  ;;  %2377 = vmatprep.subr.mxu1 %v2625_v6  ;;  %v824_v55 = vsub.f32 %v822_v47, %v823_v52  ;;  %v1747_v4 = vand.u32 4294901760, %v1746_v3 }
  0x34   : > { %2378 = vmatpush3.msra.mxu1 %v2718_v7  ;;  %2381 = vmatprep.mubr.msk.f32.mxu1 %vm2626_vm0, %v2625_v6  ;;  %v1286_v63 = vsub.f32 %v1284_v59, %v1285_v61 }
  0x35   : > { %v363_v48 = vand.u32 4294901760, %v362_v46  ;;  %2379 = vmatprep.subr.mxu1 %v2625_v6  ;;  %v825_v57 = vand.u32 4294901760, %v824_v55  ;;  %v1748_v5 = vsub.f32 %v1746_v3, %v1747_v4 }
  0x36   : > { %2380 = vmatpush3.msra.mxu1 %v2721_v8  ;;  %v1287_v1 = vand.u32 4294901760, %v1286_v63 }
  0x37   : > { %2347 = vmatmul.mubr.f32.vlgmr.msra.gmra.mxu0 %v363_v48  ;;  %2382 = vmatmul.mubr.f32.vlgmr.msra.gmra.mxu1 %v359_v38 }
  0x38   : > { %2357 = vmatpush3.msra.mxu0 %v2732_v10  ;;  %2360 = vmatprep.mubr.msk.f32.mxu0 %vm2626_vm0, %v2625_v6 }
  0x39   : > { %2358 = vmatprep.subr.mxu0 %v2625_v6  ;;  %2391 = vmatprep.subr.mxu1 %v2625_v6 }
  0x3a   : > { %2359 = vmatpush3.msra.mxu0 %v2735_v11  ;;  %2392 = vmatpush3.msra.mxu1 %v2806_v49 }
  0x3b   : > { %2370 = vmatprep.subr.mxu0 %v2625_v6  ;;  %2361 = vmatmul.mubr.f32.vlgmr.msra.gmra.mxu0 %v360_v41 }
  0x3c   : > { %2371 = vmatpush3.msra.mxu0 %v2741_v19  ;;  %2374 = vmatprep.mubr.msk.f32.mxu0 %vm2626_vm0, %v2625_v6 }
  0x3d   : > { %2372 = vmatprep.subr.mxu0 %v2625_v6  ;;  %2393 = vmatprep.subr.mxu1 %v2625_v6 }
  0x3e   : > { %2373 = vmatpush3.msra.mxu0 %v2745_v20  ;;  %2394 = vmatpush3.msra.mxu1 %v2818_v53 }
  0x3f   : > { %2384 = vmatprep.subr.mxu0 %v2625_v6  ;;  %2375 = vmatmul.mubr.f32.vlgmr.msra.gmra.mxu0 %v359_v38 }
  0x40   : > { %2385 = vmatpush3.msra.mxu0 %v2750_v23  ;;  %2388 = vmatprep.mubr.msk.f32.mxu0 %vm2626_vm0, %v2625_v6 }
  0x41   : > { %2386 = vmatprep.subr.mxu0 %v2625_v6  ;;  %2395 = vmatprep.mubr.msk.f32.mxu1 %vm2626_vm0, %v2625_v6 }
  0x42   : > { %2387 = vmatpush3.msra.mxu0 %v2772_v34  ;;  %2396 = vmatmul.mubr.f32.vlgmr.msra.gmra.mxu1 %v2787_v42 }
  0x43   : > { %2398 = vmatprep.subr.mxu0 %v2625_v6  ;;  %2389 = vmatmul.mubr.f32.vlgmr.msra.gmra.mxu0 %v825_v57 }
  0x44   : > { %2399 = vmatpush3.msra.mxu0 %v2770_v33  ;;  %2405 = vmatprep.subr.mxu1 %v2625_v6 }
  0x45   : > { %2400 = vmatprep.subr.mxu0 %v2625_v6  ;;  %2406 = vmatpush3.msra.mxu1 %v2750_v23 }
  0x46   : > { %2401 = vmatpush3.msra.mxu0 %v2785_v40  ;;  %2407 = vmatprep.subr.mxu1 %v2625_v6 }
  0x47   : > { %2402 = vmatprep.mubr.msk.f32.mxu0 %vm2626_vm0, %v2625_v6  ;;  %2408 = vmatpush3.msra.mxu1 %v2772_v34 }
  0x48   : > { %2409 = vmatprep.mubr.msk.f32.mxu1 %vm2626_vm0, %v2625_v6  ;;  %2412 = vmatprep.subr.mxu0 %v2625_v6 }
  0x49   : > { %2403 = vmatmul.mubr.f32.vlgmr.msra.gmra.mxu0 %v822_v47  ;;  %2410 = vmatmul.mubr.f32.vlgmr.msra.gmra.mxu1 %v823_v52 }
  0x4a   : > { %2413 = vmatpush3.msra.mxu0 %v2782_v39  ;;  %2419 = vmatprep.subr.mxu1 %v2625_v6 }
  0x4b   : > { %2414 = vmatprep.subr.mxu0 %v2625_v6  ;;  %2420 = vmatpush3.msra.mxu1 %v2750_v23 }
  0x4c   : > { %2415 = vmatpush3.msra.mxu0 %v2797_v45  ;;  %2421 = vmatprep.subr.mxu1 %v2625_v6 }
  0x4d   : > { %2416 = vmatprep.mubr.msk.f32.mxu0 %vm2626_vm0, %v2625_v6  ;;  %2422 = vmatpush3.msra.mxu1 %v2772_v34 }
  0x4e   : > { %2423 = vmatprep.mubr.msk.f32.mxu1 %vm2626_vm0, %v2625_v6  ;;  %2426 = vmatprep.subr.mxu0 %v2625_v6 }
  0x4f   : > { %2417 = vmatmul.mubr.f32.vlgmr.msra.gmra.mxu0 %v2787_v42  ;;  %2424 = vmatmul.mubr.f32.vlgmr.msra.gmra.mxu1 %v2787_v42 }
  0x50   : > { %2427 = vmatpush3.msra.mxu0 %v2718_v7  ;;  %2433 = vmatprep.subr.mxu1 %v2625_v6 }
  0x51   : > { %2428 = vmatprep.subr.mxu0 %v2625_v6  ;;  %2434 = vmatpush3.msra.mxu1 %v2764_v30 }
  0x52   : > { %2429 = vmatpush3.msra.mxu0 %v2721_v8  ;;  %2435 = vmatprep.subr.mxu1 %v2625_v6 }
  0x53   : > { %2430 = vmatprep.mubr.msk.f32.mxu0 %vm2626_vm0, %v2625_v6  ;;  %2436 = vmatpush3.msra.mxu1 %v2766_v31 }
  0x54   : > { %2437 = vmatprep.mubr.msk.f32.mxu1 %vm2626_vm0, %v2625_v6  ;;  %2440 = vmatprep.subr.mxu0 %v2625_v6 }
  0x55   : > { %2431 = vmatmul.mubr.f32.vlgmr.msra.gmra.mxu0 %v1287_v1  ;;  %2438 = vmatmul.mubr.f32.vlgmr.msra.gmra.mxu1 %v2837_v58 }
  0x56   : > { %2441 = vmatpush3.msra.mxu0 %v2732_v10  ;;  %2447 = vmatprep.subr.mxu1 %v2625_v6 }
  0x57   : > { %2442 = vmatprep.subr.mxu0 %v2625_v6  ;;  %2448 = vmatpush3.msra.mxu1 %v2718_v7 }
  0x58   : > { %2443 = vmatpush3.msra.mxu0 %v2735_v11  ;;  %2449 = vmatprep.subr.mxu1 %v2625_v6 }
  0x59   : > { %2444 = vmatprep.mubr.msk.f32.mxu0 %vm2626_vm0, %v2625_v6  ;;  %2450 = vmatpush3.msra.mxu1 %v2721_v8 }
  0x5a   : > { %2451 = vmatprep.mubr.msk.f32.mxu1 %vm2626_vm0, %v2625_v6  ;;  %2454 = vmatprep.subr.mxu0 %v2625_v6 }
  0x5b   : > { %2445 = vmatmul.mubr.f32.vlgmr.msra.gmra.mxu0 %v1284_v59  ;;  %2452 = vmatmul.mubr.f32.vlgmr.msra.gmra.mxu1 %v1285_v61 }
  0x5c   : > { %2455 = vmatpush3.msra.mxu0 %v2741_v19  ;;  %2461 = vmatprep.subr.mxu1 %v2625_v6 }
  0x5d   : > { %2456 = vmatprep.subr.mxu0 %v2625_v6  ;;  %2462 = vmatpush3.msra.mxu1 %v2718_v7  ;;  %v1749_v7 = vand.u32 4294901760, %v1748_v5 }
  0x5e   : > { %2457 = vmatpush3.msra.mxu0 %v2745_v20  ;;  %2463 = vmatprep.subr.mxu1 %v2625_v6 }
  0x5f   : > { %2458 = vmatprep.mubr.msk.f32.mxu0 %vm2626_vm0, %v2625_v6  ;;  %2464 = vmatpush3.msra.mxu1 %v2721_v8 }
  0x60   : > { %2465 = vmatprep.mubr.msk.f32.mxu1 %vm2626_vm0, %v2625_v6  ;;  %2468 = vmatprep.subr.mxu0 %v2625_v6 }
  0x61   : > { %2459 = vmatmul.mubr.f32.vlgmr.msra.gmra.mxu0 %v2837_v58  ;;  %2466 = vmatmul.mubr.f32.vlgmr.msra.gmra.mxu1 %v2837_v58 }
  0x62   : > { %2469 = vmatpush3.msra.mxu0 %v2750_v23  ;;  %2475 = vmatprep.subr.mxu1 %v2625_v6 }
  0x63   : > { %2470 = vmatprep.subr.mxu0 %v2625_v6  ;;  %2476 = vmatpush3.msra.mxu1 %v2806_v49 }
  0x64   : > { %2471 = vmatpush3.msra.mxu0 %v2772_v34  ;;  %2477 = vmatprep.subr.mxu1 %v2625_v6 }
  0x65   : > { %2472 = vmatprep.mubr.msk.f32.mxu0 %vm2626_vm0, %v2625_v6  ;;  %2478 = vmatpush3.msra.mxu1 %v2818_v53 }
  0x66   : > { %2479 = vmatprep.mubr.msk.f32.mxu1 %vm2626_vm0, %v2625_v6  ;;  %2482 = vmatprep.subr.mxu0 %v2625_v6 }
  0x67   : > { %2473 = vmatmul.mubr.f32.vlgmr.msra.gmra.mxu0 %v1749_v7  ;;  %2480 = vmatmul.mubr.f32.vlgmr.msra.gmra.mxu1 %v2882_v2 }
  0x68   : > { %2483 = vmatpush3.msra.mxu0 %v2770_v33  ;;  %2489 = vmatprep.subr.mxu1 %v2625_v6 }
  0x69   : > { %2484 = vmatprep.subr.mxu0 %v2625_v6  ;;  %2490 = vmatpush3.msra.mxu1 %v2750_v23 }
  0x6a   : > { %2485 = vmatpush3.msra.mxu0 %v2785_v40  ;;  %2491 = vmatprep.subr.mxu1 %v2625_v6 }
  0x6b   : > { %2486 = vmatprep.mubr.msk.f32.mxu0 %vm2626_vm0, %v2625_v6  ;;  %2492 = vmatpush3.msra.mxu1 %v2772_v34 }
  0x6c   : > { %2493 = vmatprep.mubr.msk.f32.mxu1 %vm2626_vm0, %v2625_v6  ;;  %2496 = vmatprep.subr.mxu0 %v2625_v6 }
  0x6d   : > { %2487 = vmatmul.mubr.f32.vlgmr.msra.gmra.mxu0 %v1746_v3  ;;  %2494 = vmatmul.mubr.f32.vlgmr.msra.gmra.mxu1 %v1747_v4 }
  0x6e   : > { %2497 = vmatpush3.msra.mxu0 %v2782_v39  ;;  %2503 = vmatprep.subr.mxu1 %v2625_v6 }
  0x6f   : > { %2498 = vmatprep.subr.mxu0 %v2625_v6  ;;  %2504 = vmatpush3.msra.mxu1 %v2750_v23 }
  0x70   : > { %2499 = vmatpush3.msra.mxu0 %v2797_v45  ;;  %2505 = vmatprep.subr.mxu1 %v2625_v6 }
  0x71   : > { %2500 = vmatprep.mubr.msk.f32.mxu0 %vm2626_vm0, %v2625_v6  ;;  %2506 = vmatpush3.msra.mxu1 %v2772_v34 }
  0x72   : > { %2507 = vmatprep.mubr.msk.f32.mxu1 %vm2626_vm0, %v2625_v6  ;;  %2501 = vmatmul.mubr.f32.vlgmr.msra.gmra.mxu0 %v2882_v2 }
  0x73   : > { %2508 = vmatmul.mubr.f32.vlgmr.msra.gmra.mxu1 %v2882_v2 }
  0xef   : > { %v446_v8 = vpop.f32.mrf.mxu1 }
  0xf1   : > { %v2355_v9 = vpop.f32.mrf.mxu1 }
  0xf3   : > { %v597_v10 = vpop.f32.mrf.mxu1 }
  0xf5   : > { %v2369_v11 = vpop.f32.mrf.mxu1 }
  0xf7   : > { %v365_v12 = vpop.f32.mrf.mxu0  ;;  %v747_v13 = vpop.f32.mrf.mxu1 }
  0xf8   : > { %v447_v16 = vadd.f32 %v446_v8, %v365_v12 }
  0xf9   : > { %v2348_v14 = vpop.f32.mrf.mxu0  ;;  %v2383_v15 = vpop.f32.mrf.mxu1 }
  0xfb   : > { %v522_v17 = vpop.f32.mrf.mxu0 }
  0xfc   : > { %v523_v18 = vadd.f32 %v522_v17, %v447_v16 }
  0xfd   : > { %v2362_v6 = vpop.f32.mrf.mxu0 }
  0xfe   : > { %v598_v19 = vadd.f32 %v597_v10, %v523_v18 }
  0xff   : > { %v674_v20 = vpop.f32.mrf.mxu0 }
 0x100   : > { %v675_v21 = vadd.f32 %v674_v20, %v598_v19 }
 0x101   : > { %v2376_v22 = vpop.f32.mrf.mxu0 }
 0x102   : > { %v748_v23 = vadd.f32 %v747_v13, %v675_v21  ;;  %v908_v24 = vpop.f32.mrf.mxu1 }
 0x103   : > { %v827_v25 = vpop.f32.mrf.mxu0 }
 0x104   : > { %v828_v26 = vadd.f32 %v827_v25, %v748_v23  ;;  %v2397_v27 = vpop.f32.mrf.mxu1 }
 0x105   : > { %v2390_v28 = vpop.f32.mrf.mxu0 }
 0x106   : > { %v909_v29 = vadd.f32 %v908_v24, %v828_v26 }
 0x109   : > { %v984_v30 = vpop.f32.mrf.mxu0  ;;  %v1059_v31 = vpop.f32.mrf.mxu1 }
 0x10a   : > { %v985_v32 = vadd.f32 %v984_v30, %v909_v29 }
 0x10b   : > { %v2404_v33 = vpop.f32.mrf.mxu0  ;;  %v2411_v34 = vpop.f32.mrf.mxu1 }
 0x10c   : > { %v1060_v35 = vadd.f32 %v1059_v31, %v985_v32 }
 0x10f   : > { %v1136_v36 = vpop.f32.mrf.mxu0  ;;  %v1209_v37 = vpop.f32.mrf.mxu1 }
 0x110   : > { %v1137_v38 = vadd.f32 %v1136_v36, %v1060_v35 }
 0x111   : > { %v2418_v39 = vpop.f32.mrf.mxu0  ;;  %v2425_v40 = vpop.f32.mrf.mxu1 }
 0x112   : > { %v1210_v41 = vadd.f32 %v1209_v37, %v1137_v38 }
 0x114   : > { %2138 = vst.msk [vmem:[%s2960_s6] sm:$0xff] %vm2137_vm2, %v1210_v41 }
 0x115   : > { %v1289_v42 = vpop.f32.mrf.mxu0  ;;  %v1370_v43 = vpop.f32.mrf.mxu1 }
 0x116   : > { %v1371_v46 = vadd.f32 %v1370_v43, %v1289_v42 }
 0x117   : > { %v2432_v44 = vpop.f32.mrf.mxu0  ;;  %v2439_v45 = vpop.f32.mrf.mxu1 }
 0x11b   : > { %v1446_v47 = vpop.f32.mrf.mxu0  ;;  %v1521_v48 = vpop.f32.mrf.mxu1 }
 0x11c   : > { %v1447_v49 = vadd.f32 %v1446_v47, %v1371_v46 }
 0x11d   : > { %v2446_v50 = vpop.f32.mrf.mxu0  ;;  %v2453_v51 = vpop.f32.mrf.mxu1 }
 0x11e   : > { %v1522_v52 = vadd.f32 %v1521_v48, %v1447_v49 }
 0x121   : > { %v1598_v53 = vpop.f32.mrf.mxu0  ;;  %v1671_v54 = vpop.f32.mrf.mxu1 }
 0x122   : > { %v1599_v55 = vadd.f32 %v1598_v53, %v1522_v52 }
 0x123   : > { %v2460_v56 = vpop.f32.mrf.mxu0  ;;  %v2467_v57 = vpop.f32.mrf.mxu1 }
 0x124   : > { %v1672_v58 = vadd.f32 %v1671_v54, %v1599_v55 }
 0x127   : > { %v1751_v59 = vpop.f32.mrf.mxu0  ;;  %v1832_v60 = vpop.f32.mrf.mxu1 }
 0x128   : > { %v1752_v61 = vadd.f32 %v1751_v59, %v1672_v58 }
 0x129   : > { %v2474_v62 = vpop.f32.mrf.mxu0  ;;  %v2481_v63 = vpop.f32.mrf.mxu1 }
 0x12a   : > { %v1833_v0 = vadd.f32 %v1832_v60, %v1752_v61 }
 0x12d   : > { %v1908_v1 = vpop.f32.mrf.mxu0  ;;  %v1983_v2 = vpop.f32.mrf.mxu1 }
 0x12e   : > { %v1909_v3 = vadd.f32 %v1908_v1, %v1833_v0 }
 0x12f   : > { %v2488_v4 = vpop.f32.mrf.mxu0  ;;  %v2495_v5 = vpop.f32.mrf.mxu1 }
 0x130   : > { %v1984_v7 = vadd.f32 %v1983_v2, %v1909_v3 }
 0x132   : > { %v2060_v8 = vpop.f32.mrf.mxu0 }
 0x133   : > { %v2061_v9 = vadd.f32 %v2060_v8, %v1984_v7  ;;  %v2133_v10 = vpop.f32.mrf.mxu1 }
 0x134   : > { %v2502_v11 = vpop.f32.mrf.mxu0 }
 0x135   : > { %v2134_v12 = vadd.f32 %v2133_v10, %v2061_v9  ;;  %v2509_v13 = vpop.f32.mrf.mxu1 }
 0x137   : > { %2140 = vrot.lane.b32.xlu0 %v2134_v12, %s2627_s14 }
 0x1a9   : > { %v2141_v14 = vpop.permute.xlu0 %2140 }
 0x1aa   : > { %2144 = vst.msk [vmem:[%s2960_s6] sm:$0xff] %vm2143_vm3, %v2141_v14 }
 0x1ab PF: > { %s13_s18 = sadd.s32 1, %s2623_s18   ;;  %s2989_s12 = smov %s2603_s13 }
 0x1ac   : > { %p10_p12 = scmp.ge.s32.totalorder %s13_s18, 6   ;;  %s2990_s13 = smov %s2699_s25 }
 0x1ad   : > { %s2991_s14 = smov %s2615_s16  ;;  %s2992_s15 = smov %s2619_s17 }
 0x1ae   : > { %s2993_s16 = smov %s2996_s19  ;;  %s2994_s17 = smov %s3000_s20 }
 0x1af   :  { %12 = sbr.rel (!%p10_p12) target bundleno = 4 (0x4), region = 108 }

</bundles_post_ra>
